<compile_context>
chip_gen: v6e
topology: v6e:2x2x1
jax: 0.10.0
libtpu: 0.0.40
codegen_flags: <defaults>
</compile_context>

<pallas_src>
import functools
from math import gcd

import jax
import jax.numpy as jnp
from jax import lax
from jax.experimental import pallas as pl
from jax.experimental.pallas import tpu as pltpu


def _conv_gn_relu_kernel(x_ref, w_ref, gamma_ref, beta_ref, mask_ref, o_ref, *,
                         k, wp, cpg, count, eps, act):
    # x_ref:     (1, Cin, L)        bf16 zero-padded, flattened image (+ tail pad)
    # w_ref:     (k*k, Cout, Cin)   bf16 per-tap weight matrices
    # gamma/beta:(Cout, 1)          f32 GroupNorm affine
    # mask_ref:  (1, HWp)           f32 1.0 on valid (wo < Wo) columns, 0.0 on junk
    # o_ref:     (1, Cout, HWp)     f32 conv+GN+ReLU over the (Ho, Wp) flat grid
    cout = o_ref.shape[1]
    hwp = o_ref.shape[2]

    x = x_ref[0]                                        # (Cin, L) bf16, single load

    # Conv as k*k shifted MXU dots accumulated in f32 (in-VMEM "im2col": each tap
    # is a static lane-offset slice of the flat padded image).
    y = None
    for dh in range(k):
        for dw in range(k):
            start = dh * wp + dw
            xs = x[:, start:start + hwp]                # (Cin, HWp) bf16
            part = jnp.dot(w_ref[dh * k + dw], xs,
                           preferred_element_type=jnp.float32)  # (Cout, HWp) f32
            y = part if y is None else y + part

    # GroupNorm statistics over the valid columns only (lane-axis reductions).
    m = mask_ref[...]                                   # (1, HWp)
    ym = y * m
    s = jnp.sum(ym, axis=-1, keepdims=True)             # (Cout, 1)  sum y
    ss = jnp.sum(y * ym, axis=-1, keepdims=True)        # (Cout, 1)  sum y^2

    if cpg == 1:
        # One channel per group: per-channel stats ARE the group stats.
        gs_c, gss_c = s, ss
    else:
        # General case: fuse s/ss into one 2-column operand -> 2 tiny dots, not 4.
        g = cout // cpg
        stats = jnp.concatenate([s, ss], axis=1)                         # (Cout, 2)
        ch = lax.broadcasted_iota(jnp.int32, (cout, g), 0)
        gp = lax.broadcasted_iota(jnp.int32, (cout, g), 1)
        onehot = (ch // cpg == gp).astype(jnp.float32)                   # (Cout, G)
        gstats = jnp.dot(onehot.T, stats, preferred_element_type=jnp.float32)  # (G, 2)
        cstats = jnp.dot(onehot, gstats, preferred_element_type=jnp.float32)   # (Cout, 2)
        gs_c, gss_c = cstats[:, 0:1], cstats[:, 1:2]

    inv_count = 1.0 / count
    mean = gs_c * inv_count
    var = gss_c * inv_count - mean * mean               # biased var (PyTorch GN), f32
    inv = lax.rsqrt(var + eps)
    out = (y - mean) * (inv * gamma_ref[...]) + beta_ref[...]
    if act:
        out = jnp.maximum(out, 0.0)                     # ReLU
    o_ref[0] = out.astype(o_ref.dtype)


def conv_gn_relu(x_nchw, w_oihw, gamma, beta, *, kernel_size=3, stride=1,
                 ng=32, eps=1e-5, act=True):
    """Pallas TPU implementation of SRFNet Conv: Conv2d(bias=False)+GroupNorm+ReLU."""
    # TODO(synk): only stride=1 is supported by the fused flat-shift conv path.
    assert stride == 1, "fused Pallas path implements stride=1 (module default)"

    N, Cin, H, W = x_nchw.shape
    Cout = w_oihw.shape[0]
    k = kernel_size
    pad = (k - 1) // 2
    Hp, Wp = H + 2 * pad, W + 2 * pad
    Ho, Wo = Hp - k + 1, Wp - k + 1
    HWp = Ho * Wp                                       # flat (Ho, Wp) output grid

    # ---- glue: zero-pad + flatten (NO k^2 im2col materialization in HBM) ----
    xp = jnp.pad(x_nchw.astype(jnp.float32),
                 ((0, 0), (0, 0), (pad, pad), (pad, pad)))          # (N, Cin, Hp, Wp)
    x_flat = xp.reshape(N, Cin, Hp * Wp)
    # Tail-pad so the largest tap slice stays in bounds; round L to a lane multiple.
    L = ((Hp * Wp + (k - 1) + 127) // 128) * 128
    x_flat = jnp.pad(x_flat, ((0, 0), (0, 0), (0, L - Hp * Wp))).astype(jnp.bfloat16)

    # conv weight (Cout, Cin, kh, kw) -> (k*k, Cout, Cin), bf16 for the MXU.
    w_taps = jnp.transpose(w_oihw, (2, 3, 0, 1)).reshape(k * k, Cout, Cin)
    w_taps = w_taps.astype(jnp.bfloat16)

    gamma2 = gamma.reshape(Cout, 1).astype(jnp.float32)
    beta2 = beta.reshape(Cout, 1).astype(jnp.float32)

    # Validity mask over the flat (Ho, Wp) grid: columns wo >= Wo are wrap junk.
    col = jnp.arange(HWp, dtype=jnp.int32) % Wp
    mask = (col < Wo).astype(jnp.float32).reshape(1, HWp)

    # GroupNorm grouping (the PyTorch module itself uses gcd(ng, n_out) groups).
    G = gcd(ng, Cout)
    cpg = Cout // G
    count = float(Ho * Wo * cpg)

    kernel = functools.partial(_conv_gn_relu_kernel, k=k, wp=Wp, cpg=cpg,
                               count=count, eps=eps, act=act)

    out = pl.pallas_call(
        kernel,
        out_shape=jax.ShapeDtypeStruct((N, Cout, HWp), jnp.float32),
        grid_spec=pltpu.PrefetchScalarGridSpec(
            num_scalar_prefetch=0,
            grid=(N,),
            in_specs=[
                pl.BlockSpec((1, Cin, L), lambda b: (b, 0, 0)),
                pl.BlockSpec((k * k, Cout, Cin), lambda b: (0, 0, 0)),
                pl.BlockSpec((Cout, 1), lambda b: (0, 0)),
                pl.BlockSpec((Cout, 1), lambda b: (0, 0)),
                pl.BlockSpec((1, HWp), lambda b: (0, 0)),
            ],
            out_specs=pl.BlockSpec((1, Cout, HWp), lambda b: (b, 0, 0)),
        ),
        compiler_params=pltpu.CompilerParams(
            dimension_semantics=("parallel",),        # batch across cores (megacore/v7x)
            vmem_limit_bytes=32 * 1024 * 1024,        # explicit; safe on v5e/v6e/v7x
        ),
    )(x_flat, w_taps, gamma2, beta2, mask)

    # (N, Cout, Ho*Wp) -> (N, Cout, Ho, Wo): drop the junk padding columns.
    # Already channel-major, so no transpose is needed.
    return out.reshape(N, Cout, Ho, Wp)[:, :, :, :Wo]


def _reference(x, w, gamma, beta, *, kernel_size=3, stride=1, ng=32, eps=1e-5, act=True):
    pad = (kernel_size - 1) // 2
    y = lax.conv_general_dilated(
        x, w, (stride, stride), ((pad, pad), (pad, pad)),
        dimension_numbers=('NCHW', 'OIHW', 'NCHW'))
    N, C, H, W = y.shape
    G = gcd(ng, C)
    yg = y.reshape(N, G, C // G, H, W)
    mean = yg.mean(axis=(2, 3, 4), keepdims=True)
    var = yg.var(axis=(2, 3, 4), keepdims=True)
    yn = ((yg - mean) / jnp.sqrt(var + eps)).reshape(N, C, H, W)
    yn = yn * gamma[None, :, None, None] + beta[None, :, None, None]
    return jnp.maximum(yn, 0.0) if act else yn


if __name__ == "__main__":
    # Module config: Conv(n_in=4, n_out=8, kernel_size=3, stride=1, norm='GN', ng=32, act=True)
    N, Cin, Cout, H, W, k = 2, 4, 8, 16, 16, 3

    key = jax.random.PRNGKey(0)
    kx, kw, kg, kb = jax.random.split(key, 4)
    x = jax.random.normal(kx, (N, Cin, H, W), dtype=jnp.float32)
    w = jax.random.normal(kw, (Cout, Cin, k, k), dtype=jnp.float32) * 0.1   # bias=False
    gamma = 1.0 + 0.1 * jax.random.normal(kg, (Cout,), dtype=jnp.float32)   # GN affine
    beta = 0.1 * jax.random.normal(kb, (Cout,), dtype=jnp.float32)

    out = conv_gn_relu(x, w, gamma, beta, kernel_size=k, stride=1, ng=32, act=True)
    out = jax.block_until_ready(out)

    ref = _reference(x, w, gamma, beta, kernel_size=k, stride=1, ng=32, act=True)
    assert out.shape == (N, Cout, H, W), out.shape
    # Tolerance reflects intentional bf16 MXU operands (f32 accumulation / GN math).
    assert jnp.allclose(out, ref, atol=5e-2, rtol=5e-2), float(jnp.max(jnp.abs(out - ref)))

    print("KERNEL_OK")
</pallas_src>

<mosaic_0001>
module attributes {stable_mosaic.version = 11 : i64} {
  func.func @_conv_gn_relu_kernel(%arg0: i32, %arg1: memref<1x4x384xbf16, #tpu.memory_space<vmem>>, %arg2: memref<9x8x4xbf16, #tpu.memory_space<vmem>>, %arg3: memref<8x1xf32, #tpu.memory_space<vmem>>, %arg4: memref<8x1xf32, #tpu.memory_space<vmem>>, %arg5: memref<1x288xf32, #tpu.memory_space<vmem>>, %arg6: memref<1x8x288xf32, #tpu.memory_space<vmem>>) attributes {dimension_semantics = [#tpu.dimension_semantics<parallel>], iteration_bounds = array<i64: 2>, scalar_prefetch = 0 : i64, scratch_operands = 0 : i64, tpu.core_type = #tpu.core_type<tc>, window_params = [{transform_indices = @transform_0, window_bounds = array<i64: 1, 4, 384>}, {pipeline_mode = #tpu.pipeline_mode<synchronous>, transform_indices = @transform_1, window_bounds = array<i64: 9, 8, 4>}, {pipeline_mode = #tpu.pipeline_mode<synchronous>, transform_indices = @transform_2, window_bounds = array<i64: 8, 1>}, {pipeline_mode = #tpu.pipeline_mode<synchronous>, transform_indices = @transform_3, window_bounds = array<i64: 8, 1>}, {pipeline_mode = #tpu.pipeline_mode<synchronous>, transform_indices = @transform_4, window_bounds = array<i64: 1, 288>}, {transform_indices = @transform_5, window_bounds = array<i64: 1, 8, 288>}]} {
    %c0 = arith.constant 0 : index
    %c0_0 = arith.constant 0 : index
    %c0_1 = arith.constant 0 : index
    %0 = vector.load %arg1[%c0, %c0_0, %c0_1] : memref<1x4x384xbf16, #tpu.memory_space<vmem>>, vector<1x4x384xbf16>
    %1 = vector.shape_cast %0 : vector<1x4x384xbf16> to vector<4x384xbf16>
    %2 = vector.extract_strided_slice %1 {offsets = [0, 0], sizes = [4, 288], strides = [1, 1]} : vector<4x384xbf16> to vector<4x288xbf16>
    %c0_2 = arith.constant 0 : index
    %c0_3 = arith.constant 0 : index
    %c0_4 = arith.constant 0 : index
    %3 = vector.load %arg2[%c0_2, %c0_3, %c0_4] : memref<9x8x4xbf16, #tpu.memory_space<vmem>>, vector<1x8x4xbf16>
    %4 = vector.shape_cast %3 : vector<1x8x4xbf16> to vector<8x4xbf16>
    %cst = arith.constant dense<0.000000e+00> : vector<8x288xf32>
    %5 = tpu.matmul %4, %2, %cst {dimension_numbers = #tpu.dot_dimension_numbers<[1], [0], [0], [1], [0, 0, 1, 1], [], []>} : vector<8x4xbf16>, vector<4x288xbf16>, vector<8x288xf32> -> vector<8x288xf32>
    %6 = vector.extract_strided_slice %1 {offsets = [0, 1], sizes = [4, 288], strides = [1, 1]} : vector<4x384xbf16> to vector<4x288xbf16>
    %c1 = arith.constant 1 : index
    %c0_5 = arith.constant 0 : index
    %c0_6 = arith.constant 0 : index
    %7 = vector.load %arg2[%c1, %c0_5, %c0_6] : memref<9x8x4xbf16, #tpu.memory_space<vmem>>, vector<1x8x4xbf16>
    %8 = vector.shape_cast %7 : vector<1x8x4xbf16> to vector<8x4xbf16>
    %cst_7 = arith.constant dense<0.000000e+00> : vector<8x288xf32>
    %9 = tpu.matmul %8, %6, %cst_7 {dimension_numbers = #tpu.dot_dimension_numbers<[1], [0], [0], [1], [0, 0, 1, 1], [], []>} : vector<8x4xbf16>, vector<4x288xbf16>, vector<8x288xf32> -> vector<8x288xf32>
    %10 = arith.addf %5, %9 : vector<8x288xf32>
    %11 = vector.extract_strided_slice %1 {offsets = [0, 2], sizes = [4, 288], strides = [1, 1]} : vector<4x384xbf16> to vector<4x288xbf16>
    %c2 = arith.constant 2 : index
    %c0_8 = arith.constant 0 : index
    %c0_9 = arith.constant 0 : index
    %12 = vector.load %arg2[%c2, %c0_8, %c0_9] : memref<9x8x4xbf16, #tpu.memory_space<vmem>>, vector<1x8x4xbf16>
    %13 = vector.shape_cast %12 : vector<1x8x4xbf16> to vector<8x4xbf16>
    %cst_10 = arith.constant dense<0.000000e+00> : vector<8x288xf32>
    %14 = tpu.matmul %13, %11, %cst_10 {dimension_numbers = #tpu.dot_dimension_numbers<[1], [0], [0], [1], [0, 0, 1, 1], [], []>} : vector<8x4xbf16>, vector<4x288xbf16>, vector<8x288xf32> -> vector<8x288xf32>
    %15 = arith.addf %10, %14 : vector<8x288xf32>
    %16 = vector.extract_strided_slice %1 {offsets = [0, 18], sizes = [4, 288], strides = [1, 1]} : vector<4x384xbf16> to vector<4x288xbf16>
    %c3 = arith.constant 3 : index
    %c0_11 = arith.constant 0 : index
    %c0_12 = arith.constant 0 : index
    %17 = vector.load %arg2[%c3, %c0_11, %c0_12] : memref<9x8x4xbf16, #tpu.memory_space<vmem>>, vector<1x8x4xbf16>
    %18 = vector.shape_cast %17 : vector<1x8x4xbf16> to vector<8x4xbf16>
    %cst_13 = arith.constant dense<0.000000e+00> : vector<8x288xf32>
    %19 = tpu.matmul %18, %16, %cst_13 {dimension_numbers = #tpu.dot_dimension_numbers<[1], [0], [0], [1], [0, 0, 1, 1], [], []>} : vector<8x4xbf16>, vector<4x288xbf16>, vector<8x288xf32> -> vector<8x288xf32>
    %20 = arith.addf %15, %19 : vector<8x288xf32>
    %21 = vector.extract_strided_slice %1 {offsets = [0, 19], sizes = [4, 288], strides = [1, 1]} : vector<4x384xbf16> to vector<4x288xbf16>
    %c4 = arith.constant 4 : index
    %c0_14 = arith.constant 0 : index
    %c0_15 = arith.constant 0 : index
    %22 = vector.load %arg2[%c4, %c0_14, %c0_15] : memref<9x8x4xbf16, #tpu.memory_space<vmem>>, vector<1x8x4xbf16>
    %23 = vector.shape_cast %22 : vector<1x8x4xbf16> to vector<8x4xbf16>
    %cst_16 = arith.constant dense<0.000000e+00> : vector<8x288xf32>
    %24 = tpu.matmul %23, %21, %cst_16 {dimension_numbers = #tpu.dot_dimension_numbers<[1], [0], [0], [1], [0, 0, 1, 1], [], []>} : vector<8x4xbf16>, vector<4x288xbf16>, vector<8x288xf32> -> vector<8x288xf32>
    %25 = arith.addf %20, %24 : vector<8x288xf32>
    %26 = vector.extract_strided_slice %1 {offsets = [0, 20], sizes = [4, 288], strides = [1, 1]} : vector<4x384xbf16> to vector<4x288xbf16>
    %c5 = arith.constant 5 : index
    %c0_17 = arith.constant 0 : index
    %c0_18 = arith.constant 0 : index
    %27 = vector.load %arg2[%c5, %c0_17, %c0_18] : memref<9x8x4xbf16, #tpu.memory_space<vmem>>, vector<1x8x4xbf16>
    %28 = vector.shape_cast %27 : vector<1x8x4xbf16> to vector<8x4xbf16>
    %cst_19 = arith.constant dense<0.000000e+00> : vector<8x288xf32>
    %29 = tpu.matmul %28, %26, %cst_19 {dimension_numbers = #tpu.dot_dimension_numbers<[1], [0], [0], [1], [0, 0, 1, 1], [], []>} : vector<8x4xbf16>, vector<4x288xbf16>, vector<8x288xf32> -> vector<8x288xf32>
    %30 = arith.addf %25, %29 : vector<8x288xf32>
    %31 = vector.extract_strided_slice %1 {offsets = [0, 36], sizes = [4, 288], strides = [1, 1]} : vector<4x384xbf16> to vector<4x288xbf16>
    %c6 = arith.constant 6 : index
    %c0_20 = arith.constant 0 : index
    %c0_21 = arith.constant 0 : index
    %32 = vector.load %arg2[%c6, %c0_20, %c0_21] : memref<9x8x4xbf16, #tpu.memory_space<vmem>>, vector<1x8x4xbf16>
    %33 = vector.shape_cast %32 : vector<1x8x4xbf16> to vector<8x4xbf16>
    %cst_22 = arith.constant dense<0.000000e+00> : vector<8x288xf32>
    %34 = tpu.matmul %33, %31, %cst_22 {dimension_numbers = #tpu.dot_dimension_numbers<[1], [0], [0], [1], [0, 0, 1, 1], [], []>} : vector<8x4xbf16>, vector<4x288xbf16>, vector<8x288xf32> -> vector<8x288xf32>
    %35 = arith.addf %30, %34 : vector<8x288xf32>
    %36 = vector.extract_strided_slice %1 {offsets = [0, 37], sizes = [4, 288], strides = [1, 1]} : vector<4x384xbf16> to vector<4x288xbf16>
    %c7 = arith.constant 7 : index
    %c0_23 = arith.constant 0 : index
    %c0_24 = arith.constant 0 : index
    %37 = vector.load %arg2[%c7, %c0_23, %c0_24] : memref<9x8x4xbf16, #tpu.memory_space<vmem>>, vector<1x8x4xbf16>
    %38 = vector.shape_cast %37 : vector<1x8x4xbf16> to vector<8x4xbf16>
    %cst_25 = arith.constant dense<0.000000e+00> : vector<8x288xf32>
    %39 = tpu.matmul %38, %36, %cst_25 {dimension_numbers = #tpu.dot_dimension_numbers<[1], [0], [0], [1], [0, 0, 1, 1], [], []>} : vector<8x4xbf16>, vector<4x288xbf16>, vector<8x288xf32> -> vector<8x288xf32>
    %40 = arith.addf %35, %39 : vector<8x288xf32>
    %41 = vector.extract_strided_slice %1 {offsets = [0, 38], sizes = [4, 288], strides = [1, 1]} : vector<4x384xbf16> to vector<4x288xbf16>
    %c8 = arith.constant 8 : index
    %c0_26 = arith.constant 0 : index
    %c0_27 = arith.constant 0 : index
    %42 = vector.load %arg2[%c8, %c0_26, %c0_27] : memref<9x8x4xbf16, #tpu.memory_space<vmem>>, vector<1x8x4xbf16>
    %43 = vector.shape_cast %42 : vector<1x8x4xbf16> to vector<8x4xbf16>
    %cst_28 = arith.constant dense<0.000000e+00> : vector<8x288xf32>
    %44 = tpu.matmul %43, %41, %cst_28 {dimension_numbers = #tpu.dot_dimension_numbers<[1], [0], [0], [1], [0, 0, 1, 1], [], []>} : vector<8x4xbf16>, vector<4x288xbf16>, vector<8x288xf32> -> vector<8x288xf32>
    %45 = arith.addf %40, %44 : vector<8x288xf32>
    %c0_29 = arith.constant 0 : index
    %c0_30 = arith.constant 0 : index
    %46 = vector.load %arg5[%c0_29, %c0_30] : memref<1x288xf32, #tpu.memory_space<vmem>>, vector<1x288xf32>
    %47 = vector.broadcast %46 : vector<1x288xf32> to vector<8x288xf32>
    %48 = arith.mulf %45, %47 : vector<8x288xf32>
    %cst_31 = arith.constant dense<0.000000e+00> : vector<8xf32>
    %49 = vector.multi_reduction <add>, %48, %cst_31 [1] : vector<8x288xf32> to vector<8xf32>
    %50 = vector.shape_cast %49 : vector<8xf32> to vector<8x1xf32>
    %51 = arith.mulf %45, %48 : vector<8x288xf32>
    %cst_32 = arith.constant dense<0.000000e+00> : vector<8xf32>
    %52 = vector.multi_reduction <add>, %51, %cst_32 [1] : vector<8x288xf32> to vector<8xf32>
    %53 = vector.shape_cast %52 : vector<8xf32> to vector<8x1xf32>
    %cst_33 = arith.constant 3.906250e-03 : f32
    %54 = vector.broadcast %cst_33 : f32 to vector<8x1xf32>
    %55 = arith.mulf %50, %54 : vector<8x1xf32>
    %cst_34 = arith.constant 3.906250e-03 : f32
    %56 = vector.broadcast %cst_34 : f32 to vector<8x1xf32>
    %57 = arith.mulf %53, %56 : vector<8x1xf32>
    %58 = arith.mulf %55, %55 : vector<8x1xf32>
    %59 = arith.subf %57, %58 : vector<8x1xf32>
    %cst_35 = arith.constant 9.99999974E-6 : f32
    %60 = vector.broadcast %cst_35 : f32 to vector<8x1xf32>
    %61 = arith.addf %59, %60 : vector<8x1xf32>
    %62 = math.rsqrt %61 : vector<8x1xf32>
    %63 = vector.broadcast %55 : vector<8x1xf32> to vector<8x288xf32>
    %64 = arith.subf %45, %63 : vector<8x288xf32>
    %c0_36 = arith.constant 0 : index
    %c0_37 = arith.constant 0 : index
    %65 = vector.load %arg3[%c0_36, %c0_37] : memref<8x1xf32, #tpu.memory_space<vmem>>, vector<8x1xf32>
    %66 = arith.mulf %62, %65 : vector<8x1xf32>
    %67 = vector.broadcast %66 : vector<8x1xf32> to vector<8x288xf32>
    %68 = arith.mulf %64, %67 : vector<8x288xf32>
    %c0_38 = arith.constant 0 : index
    %c0_39 = arith.constant 0 : index
    %69 = vector.load %arg4[%c0_38, %c0_39] : memref<8x1xf32, #tpu.memory_space<vmem>>, vector<8x1xf32>
    %70 = vector.broadcast %69 : vector<8x1xf32> to vector<8x288xf32>
    %71 = arith.addf %68, %70 : vector<8x288xf32>
    %cst_40 = arith.constant 0.000000e+00 : f32
    %72 = vector.broadcast %cst_40 : f32 to vector<8x288xf32>
    %73 = arith.maximumf %71, %72 : vector<8x288xf32>
    %c0_41 = arith.constant 0 : index
    %c0_42 = arith.constant 0 : index
    %c0_43 = arith.constant 0 : index
    %74 = vector.load %arg6[%c0_41, %c0_42, %c0_43] : memref<1x8x288xf32, #tpu.memory_space<vmem>>, vector<1x8x288xf32>
    %75 = vector.shape_cast %74 : vector<1x8x288xf32> to vector<8x288xf32>
    %76 = vector.shape_cast %73 : vector<8x288xf32> to vector<1x8x288xf32>
    tpu.vector_store %arg6[%c0_41, %c0_42, %c0_43], %76 {strides = array<i32>} : memref<1x8x288xf32, #tpu.memory_space<vmem>>, vector<1x8x288xf32>,
    return
  }
  func.func @transform_0(%arg0: i32) -> (i32, i32, i32) {
    %c0_i32 = arith.constant 0 : i32
    %c0_i32_0 = arith.constant 0 : i32
    %c0_i32_1 = arith.constant 0 : i32
    return %arg0, %c0_i32, %c0_i32_0 : i32, i32, i32
  }
  func.func @transform_1(%arg0: i32) -> (i32, i32, i32) {
    %c0_i32 = arith.constant 0 : i32
    %c0_i32_0 = arith.constant 0 : i32
    %c0_i32_1 = arith.constant 0 : i32
    %c0_i32_2 = arith.constant 0 : i32
    return %c0_i32, %c0_i32_0, %c0_i32_1 : i32, i32, i32
  }
  func.func @transform_2(%arg0: i32) -> (i32, i32) {
    %c0_i32 = arith.constant 0 : i32
    %c0_i32_0 = arith.constant 0 : i32
    %c0_i32_1 = arith.constant 0 : i32
    return %c0_i32, %c0_i32_0 : i32, i32
  }
  func.func @transform_3(%arg0: i32) -> (i32, i32) {
    %c0_i32 = arith.constant 0 : i32
    %c0_i32_0 = arith.constant 0 : i32
    %c0_i32_1 = arith.constant 0 : i32
    return %c0_i32, %c0_i32_0 : i32, i32
  }
  func.func @transform_4(%arg0: i32) -> (i32, i32) {
    %c0_i32 = arith.constant 0 : i32
    %c0_i32_0 = arith.constant 0 : i32
    %c0_i32_1 = arith.constant 0 : i32
    return %c0_i32, %c0_i32_0 : i32, i32
  }
  func.func @transform_5(%arg0: i32) -> (i32, i32, i32) {
    %c0_i32 = arith.constant 0 : i32
    %c0_i32_0 = arith.constant 0 : i32
    %c0_i32_1 = arith.constant 0 : i32
    return %arg0, %c0_i32, %c0_i32_0 : i32, i32, i32
  }
}

</mosaic_0001>

<bundles_post_ra>
// kernel: tpu_custom_call.1
= control target key start
LH: loop header
LB: loop body
LE: loop exit
PB: predicated region body
PF: predicated region fallthrough
CT: control target
= control target key end

     0   :  { %10 = vsyncpa [#allocation3], 0  ;;  %s1841_s0 = inlined_call_operand.vmem [shape: bf16[2,4,384], index: 0, kind: input, shape index: {}]   ;;  %s1842_s1 = inlined_call_operand.vmem [shape: bf16[9,8,4], index: 1, kind: input, shape index: {}]   ;;  %s1843_s2 = inlined_call_operand.vmem [shape: f32[8,1], index: 2, kind: input, shape index: {}]   ;;  %s1844_s3 = inlined_call_operand.vmem [shape: f32[8,1], index: 3, kind: input, shape index: {}]   ;;  %s1845_s4 = inlined_call_operand.vmem [shape: f32[1,288], index: 4, kind: input, shape index: {}]   ;;  %s1846_s5 = inlined_call_operand.hbm [shape: f32[2,8,288], index: 5, kind: output, shape index: {}]  }
   0x1   :  { %12 = vsyncpa [#allocation3 + $0x1], 0  ;;  %s1612_s18 = smov 0   ;;  %s1614_s19 = smov 0  }
   0x2   :  { %s1616_s20 = smov 0   ;;  %s1618_s21 = smov 0  }
   0x3 LB: > { %s1633_s22 = sadd.s32 4294967295, %s1567_s21   ;;  %s1333_s23 = sadd.s32 4294967294, %s1567_s21   ;;  %s1567_s21 = sphi %s1618_s21, %s1852_s21   ;;  %s1563_s20 = sphi %s1616_s20, %s1851_s20   ;;  %s1559_s19 = sphi %s1614_s19, %s1850_s19   ;;  %s1555_s18 = sphi %s1612_s18, %s1849_s18  }
   0x4   : > { %s1637_s24 = sadd.s32 1, %s1567_s21   ;;  %s135_s25 = sadd.s32 1, %s1563_s20 }
   0x5   : > { %s132_s26 = ssub.s32 %s1567_s21, %s1637_s24  ;;  %p145_p0 = scmp.ne.s32.totalorder %s1563_s20, %s1559_s19 }
   0x6   : > { %p133_p1 = scmp.eq.s32.totalorder %s132_s26, 0  ;;  %p146_p2 = scmp.eq.s32.totalorder %s1633_s22, 1 }
   0x7   : > { %p151_p3 = scmp.ne.s32.totalorder %s1559_s19, %s1555_s18  ;;  %p152_p4 = scmp.eq.s32.totalorder %s1333_s23, 1 }
   0x8   : > { %s1648_s27 = scalar_select %p133_p1, %s1563_s20, %s135_s25  }
   0x9   : > { %p1650_p5 = por %p146_p2, %p145_p0  ;;  %p1654_p6 = por %p152_p4, %p151_p3 }
   0xa   : > { %p1336_p7 = scmp.ge.s32.totalorder %s1567_s21, 1  ;;  %p190_p8 = scmp.lt.s32.totalorder %s1567_s21, 3 }
   0xc   : > { %p191_p9 = pnand %p1336_p7, %p190_p8 }
   0xd   : > { %p218_p10 = scmp.lt.s32.totalorder (!%p191_p9), %s1633_s22, 1  ;;  %s1573_s10 = smov (!%p191_p9), 127  }
   0xe   : > { %194 = sbr.rel (%p191_p9) target bundleno = 725 (0x2d5), region = 40  ;;  %s1574_s11 = smov (!%p191_p9), 126  }
   0xf   : > { %s1575_s12 = smov (!%p191_p9), 110   ;;  %s1576_s13 = smov (!%p191_p9), 109  }
  0x10   : > { %s1577_s14 = smov (!%p191_p9), 108   ;;  %s1578_s15 = smov (!%p191_p9), 92  }
  0x11   : > { %s1579_s16 = smov (!%p191_p9), 91   ;;  %s1580_s17 = smov (!%p191_p9), 90  }
  0x12   : > { %s1581_s25 = smov (!%p191_p9), [#allocation2]  }
  0x13   : > { %v233_v0 = vlaneseq  ;;  %v1569_v1 = vmov 1983009808   ;;  %v1570_v3 = vmov 0.0   ;;  %s219_s30 = scalar_select %p218_p10, %s1633_s22, 1  ;;  %vm1571_vm0 = vmmov 0  }
  0x14   : > { %v231_v2 = vunpack.c.l.s4 %v1569_v1  ;;  %1394 = vmatprep.subr.bf16.mxu1 %v1570_v3  ;;  %1396 = vmatprep.mubr.msk.bf16.mxu1 %vm1571_vm0, %v1570_v3  ;;  %v1572_v6 = vmov 0   ;;  %vm258_vm1 = vcmask 1041408   ;;  %vm251_vm2 = vcmask 1039360   ;;  %v1338_v17 = vld [vmem:[%s1842_s1 + $0x4] sm:$0xf]  ;;  %s1511_s26 = sshll.u32 %s1581_s25, 4  ;;  %s1512_s26 = int_to_ptr.vmem [resolvable:$false] %s1511_s26 }
  0x15   : > { %v1663_v4 = vshrl.u32 %v233_v0, 7  ;;  %s1449_s6 = smul.u32 6, %s219_s30  ;;  %300 = vmatprep.mubr.bf16.mxu0 %v1572_v6  ;;  %1502 = vset.pattern.permute.xlu0 %v1572_v6  ;;  %vm254_vm3 = vcmask 31744   ;;  %vm450_vm4 = vcmask 1031168   ;;  %v225_v27 = vld [vmem:[%s1842_s1] sm:$0xf] }
  0x16   : > { %v232_v5 = vunpack.c.0.s8 %v231_v2  ;;  %1503 = vset.pattern.permute.xlu1 %v1572_v6  ;;  %vm557_vm5 = vcmask 900096   ;;  %v1345_v36 = vld [vmem:[%s1842_s1 + $0x8] sm:$0xf]  ;;  %vm664_vm6 = vcmask 891904   ;;  %v1349_v45 = vld [vmem:[%s1842_s1 + $0xc] sm:$0xf] }
  0x17   : > { %s222_s9 = scalar_lea.vmem %s1841_s0, %s1449_s6  ;;  %vm771_vm7 = vcmask 883712   ;;  %v1353_v53 = vld [vmem:[%s1842_s1 + $0x10] sm:$0xf]  ;;  %vm878_vm8 = vcmask 752640   ;;  %v1357_v61 = vld [vmem:[%s1842_s1 + $0x14] sm:$0xf] }
  0x18   : > { %v235_v7 = vsub.s32 %v232_v5, %v1663_v4  ;;  %v224_v8 = vld [vmem:[%s222_s9] sm:$0x3f]  ;;  %vm985_vm9 = vcmask 744448   ;;  %vm1092_vm10 = vcmask 736256   ;;  %vm1212_vm11 = vcmask 261120   ;;  %s1513_s30 = scalar_lea.vmem %s1512_s26, 768 }
  0x19   : > { %v229_v10 = vcombine.high %v224_v8, %v224_v8 }
  0x1a   : > { %v236_v9 = vrot.slane %v224_v8, %v235_v7 }
  0x1b   : > { %v243_v11 = vrot.slane %v229_v10, %v235_v7  ;;  %v1361_v7 = vld [vmem:[%s1842_s1 + $0x18] sm:$0xf] }
  0x1c   : > { %245 = vrot.lane.b32.xlu0 %v236_v9, %s1573_s10  ;;  %v244_v12 = vcombine.high %v236_v9, %v236_v9  ;;  %v353_v23 = vsel %vm258_vm1, %v236_v9, 0 }
  0x1d   : > { %249 = vrot.lane.b32.xlu1 %v243_v11, %s1573_s10  ;;  %v359_v20 = vsel %vm258_vm1, %v243_v11, 0 }
  0x20   : > { %247 = vrot.lane.b32.xlu0 %v244_v12, %s1573_s10  ;;  %s215_s10 = sand.u32 1, %s1559_s19  }
  0x21   : > { %444 = vrot.lane.b32.xlu1 %v236_v9, %s1574_s11 }
  0x24   : > { %446 = vrot.lane.b32.xlu0 %v244_v12, %s1574_s11 }
  0x25   : > { %448 = vrot.lane.b32.xlu1 %v243_v11, %s1574_s11  ;;  %s1448_s11 = smul.u32 24, %s215_s10 }
  0x28   : > { %551 = vrot.lane.b32.xlu0 %v236_v9, %s1575_s12 }
  0x29   : > { %553 = vrot.lane.b32.xlu1 %v244_v12, %s1575_s12 }
  0x2c   : > { %555 = vrot.lane.b32.xlu0 %v243_v11, %s1575_s12  ;;  %s1450_s12 = smul.u32 384, %s1633_s22  ;;  %s1260_s22 = scalar_lea.sflag [#allocation3], %s215_s10 }
  0x2d   : > { %658 = vrot.lane.b32.xlu1 %v236_v9, %s1576_s13 }
  0x30   : > { %660 = vrot.lane.b32.xlu0 %v244_v12, %s1576_s13 }
  0x31   : > { %662 = vrot.lane.b32.xlu1 %v243_v11, %s1576_s13  ;;  %s217_s13 = scalar_lea.vmem [#allocation2], %s1448_s11 }
  0x34   : > { %765 = vrot.lane.b32.xlu0 %v236_v9, %s1577_s14 }
  0x35   : > { %767 = vrot.lane.b32.xlu1 %v244_v12, %s1577_s14 }
  0x38   : > { %769 = vrot.lane.b32.xlu0 %v243_v11, %s1577_s14  ;;  %s1274_s14 = sshll.u32 %s217_s13, 4  ;;  %s1801_s14 = int_to_ptr.vmem [resolvable:$true] %s1274_s14 }
  0x39   : > { %872 = vrot.lane.b32.xlu1 %v236_v9, %s1578_s15  ;;  %s1507_s23 = scalar_lea.vmem %s1801_s14, 384  ;;  %p1514_p0 = scmp.lt.s32.totalorder %s1801_s14, %s1512_s26 }
  0x3a   : > { %p1508_p11 = scmp.ne.s32.totalorder %s1801_s14, %s1507_s23  ;;  %p1515_p1 = scmp.lt.s32.totalorder %s1513_s30, %s1507_s23 }
  0x3c   : > { %874 = vrot.lane.b32.xlu0 %v244_v12, %s1578_s15  ;;  %p1509_p12 = pnand %p1508_p11, %p1650_p5  ;;  %p1516_p2 = por %p1515_p1, %p1514_p0 }
  0x3d   : > { %876 = vrot.lane.b32.xlu1 %v243_v11, %s1578_s15 }
  0x3e   : > { %p1510_p13 = pneg %p1509_p12 }
  0x40   : > { %979 = vrot.lane.b32.xlu0 %v236_v9, %s1579_s16  ;;  %p1517_p3 = pnand %p1516_p2, %p1510_p13 }
  0x41   : > { %981 = vrot.lane.b32.xlu1 %v244_v12, %s1579_s16 }
  0x44   : > { %983 = vrot.lane.b32.xlu0 %v243_v11, %s1579_s16 }
  0x45   : > { %1086 = vrot.lane.b32.xlu1 %v236_v9, %s1580_s17 }
  0x48   : > { %1088 = vrot.lane.b32.xlu0 %v244_v12, %s1580_s17 }
  0x49   : > { %1090 = vrot.lane.b32.xlu1 %v243_v11, %s1580_s17  ;;  %s1799_s17 = scalar_lea.hbm %s1846_s5, %s1450_s12 }
  0x8e   : > { %v246_v13 = vpop.permute.xlu0 %245 }
  0x8f   : > { %v250_v14 = vpop.permute.xlu1 %249 }
  0x90   : > { %v266_v15 = vsel %vm258_vm1, %v250_v14, 0 }
  0x91   : > { %1395 = vmatpush3.bf16.msra.mxu1 %v266_v15 }
  0x92   : > { %v248_v16 = vpop.permute.xlu0 %247  ;;  %1400 = vmatprep.subr.bf16.mxu1 %v1570_v3 }
  0x93   : > { %v253_v18 = vsel %vm251_vm2, %v248_v16, %v250_v14  ;;  %v252_v19 = vsel %vm251_vm2, %v246_v13, %v248_v16  ;;  %v445_v22 = vpop.permute.xlu1 %444  ;;  %v1365_v14 = vld [vmem:[%s1842_s1 + $0x1c] sm:$0xf] }
  0x94   : > { %1339 = vmatprep.subr.msk.bf16.mxu0 %vm258_vm1, %v253_v18  ;;  %v260_v21 = vsel %vm258_vm1, %v252_v19, 0  ;;  %1397 = vmatmul.mubr.msk.bf16.vlgmr.msra.gmra.mxu1 %vm254_vm3, %v1338_v17  ;;  %v1369_v18 = vld [vmem:[%s1842_s1 + $0x20] sm:$0xf] }
  0x95   : > { %283 = vmatpush1.bf16.msra.mxu0 %v260_v21  ;;  %1401 = vmatpush3.bf16.msra.mxu1 %v359_v20 }
  0x96   : > { %1342 = vmatprep.subr.msk.bf16.mxu0 %vm258_vm1, %v244_v12  ;;  %v447_v24 = vpop.permute.xlu0 %446  ;;  %1402 = vmatprep.mubr.msk.bf16.mxu1 %vm1571_vm0, %v1570_v3 }
  0x97   : > { %1406 = vmatprep.subr.bf16.mxu1 %v1570_v3  ;;  %v449_v25 = vpop.permute.xlu1 %448  ;;  %v451_v29 = vsel %vm450_vm4, %v445_v22, %v447_v24 }
  0x98   : > { %1340 = vmatmul.mubr.msk.bf16.vlgmr.msra.gmra.mxu0 %vm254_vm3, %v1338_v17  ;;  %v452_v26 = vsel %vm450_vm4, %v447_v24, %v449_v25  ;;  %v463_v30 = vsel %vm258_vm1, %v449_v25, 0  ;;  %v457_v32 = vsel %vm258_vm1, %v451_v29, 0 }
  0x99   : > { %376 = vmatpush1.bf16.msra.mxu0 %v353_v23  ;;  %393 = vmatprep.mubr.bf16.mxu0 %v1572_v6 }
  0x9a   : > { %1346 = vmatprep.subr.msk.bf16.mxu0 %vm258_vm1, %v452_v26  ;;  %v552_v28 = vpop.permute.xlu0 %551 }
  0x9b   : > { %v554_v31 = vpop.permute.xlu1 %553 }
  0x9c   : > { %1403 = vmatmul.mubr.msk.bf16.vlgmr.msra.gmra.mxu1 %vm254_vm3, %v225_v27  ;;  %v558_v38 = vsel %vm557_vm5, %v552_v28, %v554_v31 }
  0x9d   : > { %1407 = vmatpush3.bf16.msra.mxu1 %v463_v30  ;;  %1408 = vmatprep.mubr.msk.bf16.mxu1 %vm1571_vm0, %v1570_v3  ;;  %v564_v41 = vsel %vm258_vm1, %v558_v38, 0 }
  0x9e   : > { %v556_v33 = vpop.permute.xlu0 %555  ;;  %1412 = vmatprep.subr.bf16.mxu1 %v1570_v3 }
  0x9f   : > { %v559_v34 = vsel %vm557_vm5, %v554_v31, %v556_v33  ;;  %v659_v35 = vpop.permute.xlu1 %658  ;;  %v570_v39 = vsel %vm258_vm1, %v556_v33, 0 }
  0xa0   : > { %1343 = vmatmul.mubr.msk.bf16.vlgmr.msra.gmra.mxu0 %vm254_vm3, %v225_v27 }
  0xa1   : > { %480 = vmatpush1.bf16.msra.mxu0 %v457_v32  ;;  %497 = vmatprep.mubr.bf16.mxu0 %v1572_v6 }
  0xa2   : > { %1350 = vmatprep.subr.msk.bf16.mxu0 %vm258_vm1, %v559_v34  ;;  %v661_v37 = vpop.permute.xlu0 %660 }
  0xa3   : > { %v663_v40 = vpop.permute.xlu1 %662  ;;  %v665_v46 = vsel %vm664_vm6, %v659_v35, %v661_v37 }
  0xa4   : > { %1409 = vmatmul.mubr.msk.bf16.vlgmr.msra.gmra.mxu1 %vm254_vm3, %v1345_v36  ;;  %v666_v43 = vsel %vm664_vm6, %v661_v37, %v663_v40  ;;  %v677_v47 = vsel %vm258_vm1, %v663_v40, 0  ;;  %v671_v49 = vsel %vm258_vm1, %v665_v46, 0 }
  0xa5   : > { %1413 = vmatpush3.bf16.msra.mxu1 %v570_v39  ;;  %1414 = vmatprep.mubr.msk.bf16.mxu1 %vm1571_vm0, %v1570_v3 }
  0xa6   : > { %v766_v42 = vpop.permute.xlu0 %765  ;;  %1418 = vmatprep.subr.bf16.mxu1 %v1570_v3 }
  0xa7   : > { %v768_v44 = vpop.permute.xlu1 %767 }
  0xa8   : > { %1347 = vmatmul.mubr.msk.bf16.vlgmr.msra.gmra.mxu0 %vm254_vm3, %v1345_v36  ;;  %v772_v54 = vsel %vm771_vm7, %v766_v42, %v768_v44 }
  0xa9   : > { %587 = vmatpush1.bf16.msra.mxu0 %v564_v41  ;;  %604 = vmatprep.mubr.bf16.mxu0 %v1572_v6  ;;  %v778_v57 = vsel %vm258_vm1, %v772_v54, 0 }
  0xaa   : > { %1354 = vmatprep.subr.msk.bf16.mxu0 %vm258_vm1, %v666_v43  ;;  %v770_v48 = vpop.permute.xlu0 %769 }
  0xab   : > { %v873_v50 = vpop.permute.xlu1 %872  ;;  %v773_v51 = vsel %vm771_vm7, %v768_v44, %v770_v48  ;;  %v784_v55 = vsel %vm258_vm1, %v770_v48, 0 }
  0xac   : > { %1415 = vmatmul.mubr.msk.bf16.vlgmr.msra.gmra.mxu1 %vm254_vm3, %v1349_v45 }
  0xad   : > { %1419 = vmatpush3.bf16.msra.mxu1 %v677_v47  ;;  %1420 = vmatprep.mubr.msk.bf16.mxu1 %vm1571_vm0, %v1570_v3 }
  0xae   : > { %1424 = vmatprep.subr.bf16.mxu1 %v1570_v3  ;;  %v875_v52 = vpop.permute.xlu0 %874 }
  0xaf   : > { %v877_v56 = vpop.permute.xlu1 %876  ;;  %v879_v62 = vsel %vm878_vm8, %v873_v50, %v875_v52 }
  0xb0   : > { %1351 = vmatmul.mubr.msk.bf16.vlgmr.msra.gmra.mxu0 %vm254_vm3, %v1349_v45  ;;  %v880_v59 = vsel %vm878_vm8, %v875_v52, %v877_v56  ;;  %v891_v63 = vsel %vm258_vm1, %v877_v56, 0  ;;  %v885_v1 = vsel %vm258_vm1, %v879_v62, 0 }
  0xb1   : > { %694 = vmatpush1.bf16.msra.mxu0 %v671_v49  ;;  %711 = vmatprep.mubr.bf16.mxu0 %v1572_v6 }
  0xb2   : > { %1358 = vmatprep.subr.msk.bf16.mxu0 %vm258_vm1, %v773_v51  ;;  %v980_v58 = vpop.permute.xlu0 %979 }
  0xb3   : > { %v982_v60 = vpop.permute.xlu1 %981 }
  0xb4   : > { %1421 = vmatmul.mubr.msk.bf16.vlgmr.msra.gmra.mxu1 %vm254_vm3, %v1353_v53  ;;  %v986_v8 = vsel %vm985_vm9, %v980_v58, %v982_v60 }
  0xb5   : > { %1425 = vmatpush3.bf16.msra.mxu1 %v784_v55  ;;  %1426 = vmatprep.mubr.msk.bf16.mxu1 %vm1571_vm0, %v1570_v3  ;;  %v992_v12 = vsel %vm258_vm1, %v986_v8, 0 }
  0xb6   : > { %1430 = vmatprep.subr.bf16.mxu1 %v1570_v3  ;;  %v984_v0 = vpop.permute.xlu0 %983 }
  0xb7   : > { %v1087_v2 = vpop.permute.xlu1 %1086  ;;  %v987_v5 = vsel %vm985_vm9, %v982_v60, %v984_v0  ;;  %v998_v9 = vsel %vm258_vm1, %v984_v0, 0 }
  0xb8   : > { %1355 = vmatmul.mubr.msk.bf16.vlgmr.msra.gmra.mxu0 %vm254_vm3, %v1353_v53 }
  0xb9   : > { %801 = vmatpush1.bf16.msra.mxu0 %v778_v57  ;;  %818 = vmatprep.mubr.bf16.mxu0 %v1572_v6 }
  0xba   : > { %1362 = vmatprep.subr.msk.bf16.mxu0 %vm258_vm1, %v880_v59  ;;  %v1089_v10 = vpop.permute.xlu0 %1088 }
  0xbb   : > { %v1091_v11 = vpop.permute.xlu1 %1090  ;;  %v1093_v15 = vsel %vm1092_vm10, %v1087_v2, %v1089_v10 }
  0xbc   : > { %1427 = vmatmul.mubr.msk.bf16.vlgmr.msra.gmra.mxu1 %vm254_vm3, %v1357_v61  ;;  %v1094_v13 = vsel %vm1092_vm10, %v1089_v10, %v1091_v11  ;;  %v1105_v16 = vsel %vm258_vm1, %v1091_v11, 0  ;;  %v1099_v17 = vsel %vm258_vm1, %v1093_v15, 0 }
  0xbd   : > { %1431 = vmatpush3.bf16.msra.mxu1 %v891_v63  ;;  %1432 = vmatprep.mubr.msk.bf16.mxu1 %vm1571_vm0, %v1570_v3 }
  0xbe   : > { %1436 = vmatprep.subr.bf16.mxu1 %v1570_v3 }
  0xc0   : > { %1359 = vmatmul.mubr.msk.bf16.vlgmr.msra.gmra.mxu0 %vm254_vm3, %v1357_v61 }
  0xc1   : > { %908 = vmatpush1.bf16.msra.mxu0 %v885_v1  ;;  %925 = vmatprep.mubr.bf16.mxu0 %v1572_v6 }
  0xc2   : > { %1366 = vmatprep.subr.msk.bf16.mxu0 %vm258_vm1, %v987_v5 }
  0xc4   : > { %1433 = vmatmul.mubr.msk.bf16.vlgmr.msra.gmra.mxu1 %vm254_vm3, %v1361_v7 }
  0xc5   : > { %1437 = vmatpush3.bf16.msra.mxu1 %v998_v9  ;;  %1438 = vmatprep.mubr.msk.bf16.mxu1 %vm1571_vm0, %v1570_v3 }
  0xc6   : > { %1442 = vmatprep.subr.bf16.mxu1 %v1570_v3 }
  0xc8   : > { %1363 = vmatmul.mubr.msk.bf16.vlgmr.msra.gmra.mxu0 %vm254_vm3, %v1361_v7 }
  0xc9   : > { %1015 = vmatpush1.bf16.msra.mxu0 %v992_v12  ;;  %1032 = vmatprep.mubr.bf16.mxu0 %v1572_v6 }
  0xca   : > { %1370 = vmatprep.subr.msk.bf16.mxu0 %vm258_vm1, %v1094_v13 }
  0xcc   : > { %1439 = vmatmul.mubr.msk.bf16.vlgmr.msra.gmra.mxu1 %vm254_vm3, %v1365_v14 }
  0xcd   : > { %1443 = vmatpush3.bf16.msra.mxu1 %v1105_v16  ;;  %1444 = vmatprep.mubr.msk.bf16.mxu1 %vm1571_vm0, %v1570_v3 }
  0xd0   : > { %1367 = vmatmul.mubr.msk.bf16.vlgmr.msra.gmra.mxu0 %vm254_vm3, %v1365_v14 }
  0xd1   : > { %1122 = vmatpush1.bf16.msra.mxu0 %v1099_v17  ;;  %1139 = vmatprep.mubr.bf16.mxu0 %v1572_v6 }
  0xd4   : > { %1445 = vmatmul.mubr.msk.bf16.vlgmr.msra.gmra.mxu1 %vm254_vm3, %v1369_v18 }
  0xd8   : > { %1371 = vmatmul.mubr.msk.bf16.vlgmr.msra.gmra.mxu0 %vm254_vm3, %v1369_v18 }
 0x154   : > { %v343_v19 = vpop.f32.mrf.mxu1 }
 0x156   : > { %v1398_v20 = vpop.f32.mrf.mxu1 }
 0x158   : > { %v302_v21 = vpop.f32.mrf.mxu0  ;;  %v346_v22 = vpop.f32.mrf.mxu1 }
 0x15a   : > { %v304_v23 = vpop.f32.mrf.mxu0  ;;  %v1399_v24 = vpop.f32.mrf.mxu1 }
 0x15c   : > { %v306_v3 = vpop.f32.mrf.mxu0  ;;  %v436_v25 = vpop.f32.mrf.mxu1 }
 0x15d   : > { %v437_v5 = vadd.f32 %v436_v25, %v343_v19 }
 0x15e   : > { %v307_v26 = vpop.f32.mrf.mxu0  ;;  %v1404_v27 = vpop.f32.mrf.mxu1 }
 0x160   : > { %v395_v28 = vpop.f32.mrf.mxu0  ;;  %v439_v6 = vpop.f32.mrf.mxu1 }
 0x161   : > { %v396_v11 = vadd.f32 %v395_v28, %v302_v21  ;;  %v1203_v21 = vsub.s32 2, %v1663_v4 }
 0x162   : > { %v397_v29 = vpop.f32.mrf.mxu0  ;;  %v1405_v30 = vpop.f32.mrf.mxu1 }
 0x163   : > { %v398_v15 = vadd.f32 %v397_v29, %v304_v23  ;;  %v1191_v23 = vld [vmem:[%s1845_s4] sm:$0x7]  ;;  %v1195_v29 = vsub.s32 0, %v1663_v4 }
 0x164   : > { %v399_v31 = vpop.f32.mrf.mxu0  ;;  %v540_v32 = vpop.f32.mrf.mxu1 }
 0x165   : > { %v548_v9 = vadd.f32 %v540_v32, %v437_v5 }
 0x166   : > { %v400_v33 = vpop.f32.mrf.mxu0  ;;  %v1410_v34 = vpop.f32.mrf.mxu1 }
 0x168   : > { %v499_v35 = vpop.f32.mrf.mxu0  ;;  %v543_v36 = vpop.f32.mrf.mxu1 }
 0x169   : > { %v546_v16 = vadd.f32 %v499_v35, %v396_v11 }
 0x16a   : > { %v501_v37 = vpop.f32.mrf.mxu0  ;;  %v1411_v38 = vpop.f32.mrf.mxu1 }
 0x16b   : > { %v547_v22 = vadd.f32 %v501_v37, %v398_v15  ;;  %v1234_v15 = vld [vmem:[%s1843_s2] sm:$0xff] }
 0x16c   : > { %v503_v39 = vpop.f32.mrf.mxu0  ;;  %v647_v40 = vpop.f32.mrf.mxu1 }
 0x16d   : > { %v655_v13 = vadd.f32 %v647_v40, %v548_v9  ;;  %v1199_v39 = vsub.s32 1, %v1663_v4 }
 0x16e   : > { %v504_v41 = vpop.f32.mrf.mxu0  ;;  %v1416_v42 = vpop.f32.mrf.mxu1 }
 0x16f   : > { %v1204_v42 = vrot.slane %v1191_v23, %v1203_v21 }
 0x170   : > { %v606_v43 = vpop.f32.mrf.mxu0  ;;  %v650_v44 = vpop.f32.mrf.mxu1 }
 0x171   : > { %v653_v24 = vadd.f32 %v606_v43, %v546_v16 }
 0x172   : > { %v608_v45 = vpop.f32.mrf.mxu0  ;;  %v1417_v46 = vpop.f32.mrf.mxu1 }
 0x173   : > { %v654_v6 = vadd.f32 %v608_v45, %v547_v22  ;;  %v1196_v45 = vrot.slane %v1191_v23, %v1195_v29 }
 0x174   : > { %v610_v47 = vpop.f32.mrf.mxu0  ;;  %v754_v48 = vpop.f32.mrf.mxu1 }
 0x175   : > { %v762_v18 = vadd.f32 %v754_v48, %v655_v13 }
 0x176   : > { %v611_v49 = vpop.f32.mrf.mxu0  ;;  %v1422_v50 = vpop.f32.mrf.mxu1 }
 0x177   : > { %v1200_v50 = vrot.slane %v1191_v23, %v1199_v39 }
 0x178   : > { %v713_v51 = vpop.f32.mrf.mxu0  ;;  %v757_v52 = vpop.f32.mrf.mxu1 }
 0x179   : > { %v760_v19 = vadd.f32 %v713_v51, %v653_v24 }
 0x17a   : > { %v715_v53 = vpop.f32.mrf.mxu0  ;;  %v1423_v54 = vpop.f32.mrf.mxu1 }
 0x17b   : > { %v761_v28 = vadd.f32 %v715_v53, %v654_v6 }
 0x17c   : > { %v717_v55 = vpop.f32.mrf.mxu0  ;;  %v861_v56 = vpop.f32.mrf.mxu1 }
 0x17d   : > { %v869_v26 = vadd.f32 %v861_v56, %v762_v18 }
 0x17e   : > { %v718_v57 = vpop.f32.mrf.mxu0  ;;  %v1428_v58 = vpop.f32.mrf.mxu1 }
 0x180   : > { %v820_v59 = vpop.f32.mrf.mxu0  ;;  %v864_v60 = vpop.f32.mrf.mxu1 }
 0x181   : > { %v867_v32 = vadd.f32 %v820_v59, %v760_v19 }
 0x182   : > { %v822_v61 = vpop.f32.mrf.mxu0  ;;  %v1429_v62 = vpop.f32.mrf.mxu1 }
 0x183   : > { %v868_v36 = vadd.f32 %v822_v61, %v761_v28 }
 0x184   : > { %v824_v63 = vpop.f32.mrf.mxu0  ;;  %v968_v0 = vpop.f32.mrf.mxu1 }
 0x185   : > { %v976_v30 = vadd.f32 %v968_v0, %v869_v26 }
 0x186   : > { %v825_v1 = vpop.f32.mrf.mxu0  ;;  %v1434_v2 = vpop.f32.mrf.mxu1 }
 0x188   : > { %v927_v7 = vpop.f32.mrf.mxu0  ;;  %v971_v8 = vpop.f32.mrf.mxu1 }
 0x189   : > { %v974_v37 = vadd.f32 %v927_v7, %v867_v32  ;;  %v1244_v7 = vld [vmem:[%s1844_s3] sm:$0xff] }
 0x18a   : > { %v929_v10 = vpop.f32.mrf.mxu0  ;;  %v1435_v12 = vpop.f32.mrf.mxu1 }
 0x18b   : > { %v975_v43 = vadd.f32 %v929_v10, %v868_v36 }
 0x18c   : > { %v931_v14 = vpop.f32.mrf.mxu0  ;;  %v1075_v17 = vpop.f32.mrf.mxu1 }
 0x18d   : > { %v1083_v34 = vadd.f32 %v1075_v17, %v976_v30 }
 0x18e   : > { %v932_v20 = vpop.f32.mrf.mxu0  ;;  %v1440_v3 = vpop.f32.mrf.mxu1 }
 0x190   : > { %v1034_v27 = vpop.f32.mrf.mxu0  ;;  %v1078_v25 = vpop.f32.mrf.mxu1 }
 0x191   : > { %v1081_v44 = vadd.f32 %v1034_v27, %v974_v37 }
 0x192   : > { %v1036_v31 = vpop.f32.mrf.mxu0  ;;  %v1441_v33 = vpop.f32.mrf.mxu1 }
 0x193   : > { %v1082_v48 = vadd.f32 %v1036_v31, %v975_v43 }
 0x194   : > { %v1038_v35 = vpop.f32.mrf.mxu0  ;;  %v1182_v38 = vpop.f32.mrf.mxu1 }
 0x195   : > { %v1190_v40 = vadd.f32 %v1182_v38, %v1083_v34 }
 0x196   : > { %v1039_v41 = vpop.f32.mrf.mxu0  ;;  %v1446_v46 = vpop.f32.mrf.mxu1 }
 0x197   : > { %v1210_v53 = vmul.f32 %v1204_v42, %v1190_v40 }
 0x198   : > { %v1141_v47 = vpop.f32.mrf.mxu0  ;;  %v1185_v51 = vpop.f32.mrf.mxu1 }
 0x199   : > { %v1188_v49 = vadd.f32 %v1141_v47, %v1081_v44  ;;  %v1219_v59 = vmul.f32 %v1210_v53, %v1190_v40  ;;  %v1213_v63 = vsel %vm1212_vm11, %v1210_v53, 0.0 }
 0x19a   : > { %v1143_v52 = vpop.f32.mrf.mxu0  ;;  %v1447_v56 = vpop.f32.mrf.mxu1 }
 0x19b   : > { %v1208_v54 = vmul.f32 %v1196_v45, %v1188_v49  ;;  %v1189_v55 = vadd.f32 %v1143_v52, %v1082_v48  ;;  %v1221_v2 = vsel %vm1212_vm11, %v1219_v59, 0.0 }
 0x19c   : > { %v1145_v57 = vpop.f32.mrf.mxu0 }
 0x19d   : > { %v1209_v58 = vmul.f32 %v1200_v50, %v1189_v55  ;;  %v1217_v60 = vmul.f32 %v1208_v54, %v1188_v49 }
 0x19e   : > { %v1146_v4 = vpop.f32.mrf.mxu0 }
 0x19f   : > { %v1218_v61 = vmul.f32 %v1209_v58, %v1189_v55  ;;  %v1211_v62 = vadd.f32 %v1209_v58, %v1208_v54 }
 0x1a1   : > { %v1214_v0 = vadd.f32 %v1213_v63, %v1211_v62  ;;  %v1220_v1 = vadd.f32 %v1218_v61, %v1217_v60 }
 0x1a3   : > { %1215 = vadd.xlane.f32.xlu0 %v1214_v0  ;;  %v1222_v5 = vadd.f32 %v1221_v2, %v1220_v1 }
 0x1a5   : > { %1223 = vadd.xlane.f32.xlu1 %v1222_v5 }
 0x1b6   : > { %1247 = vperm.xlu1 %1503, %v1244_v7  }
 0x22c   : > { %v1216_v8 = vpop.xlane.xlu0 %1215 }
 0x22d   : > { %v1225_v9 = vmul.f32 0.00390625, %v1216_v8 }
 0x22e   : > { %v1224_v10 = vpop.xlane.xlu1 %1223 }
 0x22f   : > { %v1226_v11 = vmul.f32 0.00390625, %v1224_v10  ;;  %v1227_v12 = vmul.f32 %v1225_v9, %v1225_v9  ;;  %v1231_v18 = vsub.f32 %v1188_v49, %v1225_v9  ;;  %v1232_v20 = vsub.f32 %v1189_v55, %v1225_v9 }
 0x230   : > { %v1233_v22 = vsub.f32 %v1190_v40, %v1225_v9 }
 0x231   : > { %v1228_v13 = vsub.f32 %v1226_v11, %v1227_v12 }
 0x232   : > { %v1248_v3 = vpop.permute.xlu1 %1247 }
 0x233   : > { %v1229_v14 = vadd.f32 1e-05, %v1228_v13 }
 0x235   : > { %1505 = vrsqrt.f32 %v1229_v14 }
 0x242   : > { %v1506_v16 = vpop.eup %1505 }
 0x243   : > { %v1235_v17 = vmul.f32 %v1506_v16, %v1234_v15 }
 0x245   : > { %1238 = vperm.xlu0 %1502, %v1235_v17  }
 0x2c0   : > { %v1239_v24 = vpop.permute.xlu0 %1238 }
 0x2c1   : > { %v1241_v26 = vmul.f32 %v1239_v24, %v1231_v18  ;;  %v1242_v27 = vmul.f32 %v1239_v24, %v1232_v20  ;;  %v1243_v6 = vmul.f32 %v1239_v24, %v1233_v22 }
 0x2c3   : > { %v1250_v19 = vadd.f32 %v1248_v3, %v1241_v26  ;;  %v1251_v25 = vadd.f32 %v1248_v3, %v1242_v27  ;;  %v1252_v30 = vadd.f32 %v1248_v3, %v1243_v6 }
 0x2c5   : > { %v1253_v31 = vmax.f32 %v1250_v19, 0.0  ;;  %v1254_v21 = vmax.f32 %v1251_v25, 0.0  ;;  %v1255_v28 = vmax.f32 %v1252_v30, 0.0 }
 0x2c7   : > { %1256 = vst [vmem:[%s217_s13] sm:$0xff] %v1253_v31  ;;  %1257 = vst [vmem:[%s217_s13 + $0x8] sm:$0xff] %v1254_v21 }
 0x2c8   : > { %1258 = vst.msk [vmem:[%s217_s13 + $0x10] sm:$0xff] %vm1212_vm11, %v1255_v28 }
 0x2c9   : > { %1520 = shalt.err (!%p1517_p3)
}
 0x2ca   : > { %s1521_s6 = scalar_lea.hbm %s1799_s17, 384  ;;  %s1525_s9 = scalar_lea.hbm %s1846_s5, 768 }
 0x2cb   : > { %p1522_p4 = scmp.ne.s32.totalorder %s1799_s17, %s1521_s6  ;;  %p1526_p9 = scmp.lt.s32.totalorder %s1799_s17, %s1846_s5 }
 0x2cc   : > { %p1527_p10 = scmp.lt.s32.totalorder %s1525_s9, %s1521_s6 }
 0x2cd   : > { %p1523_p7 = pnand %p1522_p4, %p1650_p5 }
 0x2ce   : > { %p1528_p11 = por %p1527_p10, %p1526_p9 }
 0x2cf   : > { %p1524_p8 = pneg %p1523_p7 }
 0x2d1   : > { %p1529_p12 = pnand %p1528_p11, %p1524_p8 }
 0x2d3   : > { %1532 = shalt.err (!%p1529_p12)
}
 0x2d4   : > { %1451 = dma.vmem_to_hbm [thread:$0]  (%p1650_p5), %s1801_s14, 384, %s1799_s17, %s1260_s22  }
 0x2d5 PF: > { %p1457_p13 = scmp.ge.s32.totalorder %s1567_s21, 2  ;;  %s1286_s12 = sand.u32 1, %s1555_s18  }
 0x2d6   : > { %s1287_s13 = scalar_lea.sflag [#allocation3], %s1286_s12 }
 0x2d7   : > { %p1454_p0 = pnand %p1457_p13, %p1654_p6 }
 0x2d9   : > { %p1455_p1 = pneg %p1454_p0 }
 0x2db   : > { %1550 = dma.done.wait (%p1455_p1), %s1287_s13, 384  }
 0x2dc   : > { %1552 = vsyncadd (%p1455_p1), %s1287_s13, 4294966912  ;;  %p15_p2 = scmp.ge.s32.totalorder %s1637_s24, 4   ;;  %s1849_s18 = smov %s1559_s19 }
 0x2dd   : > { %s1850_s19 = smov %s1563_s20  ;;  %s1851_s20 = smov %s1648_s27 }
 0x2de   : > { %s1852_s21 = smov %s1637_s24  ;;  %17 = sbr.rel (!%p15_p2) target bundleno = 3 (0x3), region = 83 }
 0x2e3   :  { %1292 = vsyncpa [#allocation3], 1 }
 0x2e4   :  { %1294 = vsyncpa [#allocation3 + $0x1], 1 }

</bundles_post_ra>
